<compile_context>
chip_gen: v7x
topology: tpu7x:2x2x1
jax: 0.10.0
libtpu: 0.0.40
codegen_flags: <defaults>
</compile_context>

<pallas_src>
import functools
import math

import jax
import jax.numpy as jnp
from jax.experimental import pallas as pl
from jax.experimental.pallas import tpu as pltpu


def _round_up(x, m):
    return ((x + m - 1) // m) * m


def _sublane(dtype):
    # Rows per sublane-packed tile: 8 for 4-byte, 16 for 2-byte, 32 for 1-byte.
    return {4: 8, 2: 16, 1: 32}[jnp.dtype(dtype).itemsize]


def _choose_tm(m, sublane, max_tm=512):
    """Pick an M tile that is sublane-aligned and minimizes padding waste."""
    m_aligned = _round_up(m, sublane)
    if m_aligned <= max_tm:
        return m_aligned
    best = None
    for cand in (512, 384, 256, 192, 128, 96, 64, 48, 32, 16, 8):
        if cand > max_tm or cand % sublane:
            continue
        pad = _round_up(m, cand) - m
        key = (pad, -cand)  # least padding, then largest tile
        if best is None or key < best[0]:
            best = (key, cand)
    return best[1]


def _choose_nk_tiles(out_dim, in_dim):
    """N/K tiles: 256-aligned (v6e/v7x MXU width); stream whole dim when moderate."""
    LANE = 256
    n_pad = _round_up(out_dim, LANE)
    k_pad = _round_up(in_dim, LANE)
    tn = n_pad if n_pad <= 2048 else 512
    tk = k_pad if k_pad <= 2048 else 512
    n_pad = _round_up(n_pad, tn)
    k_pad = _round_up(k_pad, tk)
    return tn, tk, n_pad, k_pad


def _linear_kernel(x_ref, w_ref, b_ref, o_ref, acc_ref):
    # x_ref: (tm, tk)  w_ref: (tk, tn)  b_ref: (1, tn) f32
    # acc_ref: (tm, tn) f32 scratch, resident across the K grid axis.
    k = pl.program_id(2)

    @pl.when(k == 0)
    def _():
        # Initialize the accumulator with the broadcast f32 bias: the bias add
        # rides the otherwise-idle k==0 fill, epilogue becomes cast-only.
        acc_ref[...] = jnp.broadcast_to(
            b_ref[...].astype(jnp.float32), acc_ref.shape
        )

    acc_ref[...] += jnp.dot(
        x_ref[...], w_ref[...], preferred_element_type=jnp.float32
    )

    @pl.when(k == pl.num_programs(2) - 1)
    def _():
        o_ref[...] = acc_ref[...].astype(o_ref.dtype)


@functools.partial(
    jax.jit,
    static_argnames=("in_dim", "out_dim", "tn", "tk", "compute_dtype"),
)
def _linear_forward(x, w_prepped, b_prepped, *, in_dim, out_dim, tn, tk,
                    compute_dtype):
    """x: (..., in_dim); w_prepped: (k_pad, n_pad) compute_dtype;
    b_prepped: (1, n_pad) f32. Returns (..., out_dim) in x.dtype."""
    orig_shape = x.shape
    out_dtype = x.dtype
    x2d = x.reshape(-1, in_dim)
    m = x2d.shape[0]

    k_pad, n_pad = w_prepped.shape

    sub = _sublane(compute_dtype)
    tm = _choose_tm(m, sub)
    m_pad = _round_up(m, tm)

    # Cast activations to the MXU compute dtype; zero-pad M / K (padded-K rows
    # contribute 0 to the accumulator; padded M rows are sliced off below).
    x_c = x2d.astype(compute_dtype)
    if m_pad != m or k_pad != in_dim:
        x_c = jnp.pad(x_c, ((0, m_pad - m), (0, k_pad - in_dim)))

    grid = (m_pad // tm, n_pad // tn, k_pad // tk)

    # VMEM budget: double-buffered inputs + double-buffered output + f32 acc.
    cbytes = jnp.dtype(compute_dtype).itemsize
    obytes = jnp.dtype(out_dtype).itemsize
    vmem_est = (2 * (tm * tk + tk * tn) * cbytes
                + 2 * tm * tn * obytes
                + tm * tn * 4
                + 2 * tn * 4)
    compiler_kwargs = {}
    if vmem_est > 30 * (1 << 20):
        compiler_kwargs["vmem_limit_bytes"] = min(
            int(vmem_est * 1.25), 48 * (1 << 20)
        )

    out = pl.pallas_call(
        _linear_kernel,
        out_shape=jax.ShapeDtypeStruct((m_pad, n_pad), out_dtype),
        grid_spec=pltpu.PrefetchScalarGridSpec(
            num_scalar_prefetch=0,
            grid=grid,
            in_specs=[
                pl.BlockSpec((tm, tk), lambda i, j, k: (i, k)),
                pl.BlockSpec((tk, tn), lambda i, j, k: (k, j)),
                pl.BlockSpec((1, tn), lambda i, j, k: (0, j)),
            ],
            out_specs=pl.BlockSpec((tm, tn), lambda i, j, k: (i, j)),
            scratch_shapes=[pltpu.VMEM((tm, tn), jnp.float32)],
        ),
        compiler_params=pltpu.CompilerParams(
            dimension_semantics=("parallel", "parallel", "arbitrary"),
            **compiler_kwargs,
        ),
    )(x_c, w_prepped, b_prepped)

    if m_pad != m or n_pad != out_dim:
        out = out[:m, :out_dim]
    return out.reshape(*orig_shape[:-1], out_dim)


def xavier_uniform(key, shape, gain=1.0, dtype=jnp.float32):
    # Matches torch.nn.init.xavier_uniform_ for a 2-D (out_dim, in_dim) weight.
    fan_out, fan_in = shape
    limit = gain * math.sqrt(6.0 / (fan_in + fan_out))
    return jax.random.uniform(key, shape, dtype=dtype, minval=-limit, maxval=limit)


_GAINS = {"linear": 1.0, "sigmoid": 1.0, "tanh": 5.0 / 3.0, "relu": math.sqrt(2.0)}


class PallasLinear:
    """JAX/Pallas port of the PyTorch `Linear` module.

    The padded, transposed, dtype-cast weight and padded f32 bias are prepared
    once here (not per call), mirroring the review's "hoist relayout" advice.
    On v7x, if weights can be quantized, prefer fp8 (no int8 MXU path there).
    """

    def __init__(self, key, in_dim, out_dim, bias=True, w_init="linear",
                 compute_dtype=jnp.bfloat16):
        self.in_dim = in_dim
        self.out_dim = out_dim
        self.compute_dtype = compute_dtype

        k_w, k_b = jax.random.split(key)
        gain = _GAINS.get(w_init, 1.0)
        self.weight = xavier_uniform(k_w, (out_dim, in_dim), gain=gain)
        if bias:
            # nn.Linear default bias init: U(-1/sqrt(in_dim), 1/sqrt(in_dim)).
            bound = 1.0 / math.sqrt(in_dim)
            self.bias = jax.random.uniform(
                k_b, (out_dim,), dtype=jnp.float32, minval=-bound, maxval=bound
            )
        else:
            self.bias = jnp.zeros((out_dim,), jnp.float32)

        # One-time relayout: (out,in) -> (in,out), cast, pad to tile multiples.
        tn, tk, n_pad, k_pad = _choose_nk_tiles(out_dim, in_dim)
        self.tn, self.tk = tn, tk
        w_t = self.weight.T.astype(compute_dtype)
        self.w_prepped = jnp.pad(
            w_t, ((0, k_pad - in_dim), (0, n_pad - out_dim))
        )
        self.b_prepped = jnp.pad(
            self.bias.astype(jnp.float32), (0, n_pad - out_dim)
        ).reshape(1, n_pad)

    def __call__(self, x):
        return _linear_forward(
            x, self.w_prepped, self.b_prepped,
            in_dim=self.in_dim, out_dim=self.out_dim,
            tn=self.tn, tk=self.tk, compute_dtype=self.compute_dtype,
        )


if __name__ == "__main__":
    key = jax.random.PRNGKey(0)
    k_x, k_mod = jax.random.split(key)

    batch, seq, in_dim, out_dim = 2, 8, 32, 32
    x = jax.random.normal(k_x, (batch, seq, in_dim), dtype=jnp.float32)

    # Default (production) path: bf16 MXU inputs, f32 accumulation.
    lin_bf16 = PallasLinear(k_mod, in_dim, out_dim, bias=True, w_init="linear",
                            compute_dtype=jnp.bfloat16)
    y_bf16 = lin_bf16(x)
    jax.block_until_ready(y_bf16)

    # f32 path for a tight numerical check against the plain-JAX reference.
    lin_f32 = PallasLinear(k_mod, in_dim, out_dim, bias=True, w_init="linear",
                           compute_dtype=jnp.float32)
    y_f32 = lin_f32(x)
    jax.block_until_ready(y_f32)

    y_ref = x @ lin_f32.weight.T + lin_f32.bias

    assert y_bf16.shape == (batch, seq, out_dim)
    assert y_f32.shape == (batch, seq, out_dim)
    assert jnp.allclose(y_f32, y_ref, atol=1e-5, rtol=1e-5), "f32 path mismatch"
    # bf16 operands: loosened tolerance (accumulation is still f32).
    assert jnp.allclose(y_bf16, y_ref, atol=3e-2, rtol=3e-2), "bf16 path mismatch"

    print("KERNEL_OK")
</pallas_src>

<mosaic_0001>
module attributes {stable_mosaic.version = 11 : i64} {
  func.func @_linear_kernel(%arg0: i32, %arg1: i32, %arg2: i32, %arg3: memref<16x256xbf16, #tpu.memory_space<vmem>>, %arg4: memref<256x256xbf16, #tpu.memory_space<vmem>>, %arg5: memref<1x256xf32, #tpu.memory_space<vmem>>, %arg6: memref<16x256xf32, #tpu.memory_space<vmem>>, %arg7: memref<16x256xf32, #tpu.memory_space<vmem>>) attributes {dimension_semantics = [#tpu.dimension_semantics<parallel>, #tpu.dimension_semantics<parallel>, #tpu.dimension_semantics<arbitrary>], iteration_bounds = array<i64: 1, 1, 1>, scalar_prefetch = 0 : i64, scratch_operands = 1 : i64, tpu.core_type = #tpu.core_type<tc>, window_params = [{transform_indices = @transform_0, window_bounds = array<i64: 16, 256>}, {transform_indices = @transform_1, window_bounds = array<i64: 256, 256>}, {transform_indices = @transform_2, window_bounds = array<i64: 1, 256>}, {transform_indices = @transform_3, window_bounds = array<i64: 16, 256>}]} {
    %c0_i32 = arith.constant 0 : i32
    %0 = arith.cmpi eq, %arg2, %c0_i32 : i32
    %1 = arith.extui %0 : i1 to i32
    %c0_i32_0 = arith.constant 0 : i32
    %2 = arith.cmpi ne, %1, %c0_i32_0 : i32
    scf.if %2 {
      %c0_10 = arith.constant 0 : index
      %c0_11 = arith.constant 0 : index
      %12 = vector.load %arg5[%c0_10, %c0_11] : memref<1x256xf32, #tpu.memory_space<vmem>>, vector<1x256xf32>
      %13 = vector.shape_cast %12 : vector<1x256xf32> to vector<1x256xf32>
      %14 = vector.broadcast %13 : vector<1x256xf32> to vector<16x256xf32>
      %c0_12 = arith.constant 0 : index
      %c0_13 = arith.constant 0 : index
      %15 = vector.load %arg7[%c0_12, %c0_13] : memref<16x256xf32, #tpu.memory_space<vmem>>, vector<16x256xf32>
      tpu.vector_store %arg7[%c0_12, %c0_13], %14 {strides = array<i32>} : memref<16x256xf32, #tpu.memory_space<vmem>>, vector<16x256xf32>,
    } else {
    }
    %c0 = arith.constant 0 : index
    %c0_1 = arith.constant 0 : index
    %3 = vector.load %arg7[%c0, %c0_1] : memref<16x256xf32, #tpu.memory_space<vmem>>, vector<16x256xf32>
    %c0_2 = arith.constant 0 : index
    %c0_3 = arith.constant 0 : index
    %4 = vector.load %arg3[%c0_2, %c0_3] : memref<16x256xbf16, #tpu.memory_space<vmem>>, vector<16x256xbf16>
    %c0_4 = arith.constant 0 : index
    %c0_5 = arith.constant 0 : index
    %5 = vector.load %arg4[%c0_4, %c0_5] : memref<256x256xbf16, #tpu.memory_space<vmem>>, vector<256x256xbf16>
    %cst = arith.constant dense<0.000000e+00> : vector<16x256xf32>
    %6 = tpu.matmul %4, %5, %cst {dimension_numbers = #tpu.dot_dimension_numbers<[1], [0], [0], [1], [0, 0, 1, 1], [], []>} : vector<16x256xbf16>, vector<256x256xbf16>, vector<16x256xf32> -> vector<16x256xf32>
    %7 = arith.addf %3, %6 : vector<16x256xf32>
    %c0_6 = arith.constant 0 : index
    %c0_7 = arith.constant 0 : index
    %8 = vector.load %arg7[%c0_6, %c0_7] : memref<16x256xf32, #tpu.memory_space<vmem>>, vector<16x256xf32>
    tpu.vector_store %arg7[%c0_6, %c0_7], %7 {strides = array<i32>} : memref<16x256xf32, #tpu.memory_space<vmem>>, vector<16x256xf32>,
    %c0_i32_8 = arith.constant 0 : i32
    %9 = arith.cmpi eq, %arg2, %c0_i32_8 : i32
    %10 = arith.extui %9 : i1 to i32
    %c0_i32_9 = arith.constant 0 : i32
    %11 = arith.cmpi ne, %10, %c0_i32_9 : i32
    scf.if %11 {
      %c0_10 = arith.constant 0 : index
      %c0_11 = arith.constant 0 : index
      %12 = vector.load %arg7[%c0_10, %c0_11] : memref<16x256xf32, #tpu.memory_space<vmem>>, vector<16x256xf32>
      %c0_12 = arith.constant 0 : index
      %c0_13 = arith.constant 0 : index
      %13 = vector.load %arg6[%c0_12, %c0_13] : memref<16x256xf32, #tpu.memory_space<vmem>>, vector<16x256xf32>
      tpu.vector_store %arg6[%c0_12, %c0_13], %12 {strides = array<i32>} : memref<16x256xf32, #tpu.memory_space<vmem>>, vector<16x256xf32>,
    } else {
    }
    return
  }
  func.func @transform_0(%arg0: i32, %arg1: i32, %arg2: i32) -> (i32, i32) {
    %c0_i32 = arith.constant 0 : i32
    return %arg0, %arg2 : i32, i32
  }
  func.func @transform_1(%arg0: i32, %arg1: i32, %arg2: i32) -> (i32, i32) {
    %c0_i32 = arith.constant 0 : i32
    return %arg2, %arg1 : i32, i32
  }
  func.func @transform_2(%arg0: i32, %arg1: i32, %arg2: i32) -> (i32, i32) {
    %c0_i32 = arith.constant 0 : i32
    %c0_i32_0 = arith.constant 0 : i32
    return %c0_i32, %arg1 : i32, i32
  }
  func.func @transform_3(%arg0: i32, %arg1: i32, %arg2: i32) -> (i32, i32) {
    %c0_i32 = arith.constant 0 : i32
    return %arg0, %arg1 : i32, i32
  }
}

</mosaic_0001>

<bundles_post_ra>
// kernel: _linear_forward.1
= control target key start
LH: loop header
LB: loop body
LE: loop exit
PB: predicated region body
PF: predicated region fallthrough
CT: control target
= control target key end

     0   :  { %8 = vsyncpa [#allocation4], 0  ;;  %s435_s12 = smov [#allocation3]   ;;  %s491_s0 = inlined_call_operand.vmem [shape: bf16[16,256], index: 0, kind: input, shape index: {}]   ;;  %s492_s1 = inlined_call_operand.hbm [shape: bf16[256,256], index: 1, kind: input, shape index: {}]   ;;  %s493_s2 = inlined_call_operand.vmem [shape: f32[1,256], index: 2, kind: input, shape index: {}]   ;;  %s494_s3 = inlined_call_operand.vmem [shape: f32[16,256], index: 3, kind: output, shape index: {}]  }
   0x1   :  { %s16_s13 = sshll.u32 %s435_s12, 4  ;;  %s411_s16 = scalar_lea.hbm %s492_s1, 4096  ;;  %s17_s13 = int_to_ptr.vmem [resolvable:$true] %s16_s13 }
   0x2   :  { %p412_p0 = scmp.ne.s32.totalorder %s492_s1, %s411_s16  ;;  %p415_p1 = scmp.lt.u32.totalorder %s411_s16, %s492_s1 }
   0x4   :  { %p417_p2 = pnand %p415_p1, %p412_p0 }
   0x6   :  { %420 = shalt.err (!%p417_p2)
}
   0x7   :  { %s421_s21 = scalar_lea.vmem %s17_s13, 4096  ;;  %p426_p4 = scmp.lt.s32.totalorder %s17_s13, %s17_s13 }
   0x8   :  { %p422_p3 = scmp.ne.s32.totalorder %s17_s13, %s421_s21  ;;  %p427_p5 = scmp.lt.s32.totalorder %s421_s21, %s421_s21 }
   0xa   :  { %p428_p6 = por %p427_p5, %p426_p4 }
   0xc   :  { %p429_p7 = pnand %p428_p6, %p422_p3 }
   0xe   :  { %432 = shalt.err (!%p429_p7)
}
   0xf   :  { %s436_s22 = smov 128   ;;  %s437_s23 = smov 8  }
  0x10   :  { %22 = dma.hbm_to_vmem [thread:$0]  %s492_s1, 4096, %s17_s13, [#allocation4], %s436_s22, %s436_s22, %s437_s23  }
  0x11   :  { %433 = dma.done.wait [#allocation4], 4096  }
  0x12   :  { %434 = vsyncadd [#allocation4], 4294963200  ;;  %v360_v0 = vld [vmem:[#allocation3 + $0x4] ss:$8 sps:$4 sm:$0xff]   ;;  %v362_v1 = vld [vmem:[#allocation3] ss:$8 sps:$4 sm:$0xff]   ;;  %v34_v34 = vlaneseq }
  0x13   :  { %256 = vmatprep.subr.bf16.mxu0 %v360_v0  ;;  %v363_v2 = vld [vmem:[#allocation3 + $0x14] ss:$8 sps:$4 sm:$0xff]   ;;  %v365_v3 = vld [vmem:[#allocation3 + $0x10] ss:$8 sps:$4 sm:$0xff]   ;;  %v366_v4 = vld [vmem:[#allocation3 + $0x24] ss:$8 sps:$4 sm:$0xff]  }
  0x14   :  { %257 = vmatpush1.bf16.msra.mxu0 %v362_v1  ;;  %v368_v5 = vld [vmem:[#allocation3 + $0x20] ss:$8 sps:$4 sm:$0xff]   ;;  %v369_v6 = vld [vmem:[#allocation3 + $0x34] ss:$8 sps:$4 sm:$0xff]   ;;  %v371_v7 = vld [vmem:[#allocation3 + $0x30] ss:$8 sps:$4 sm:$0xff]  }
  0x15   :  { %258 = vmatprep.subr.bf16.mxu0 %v363_v2  ;;  %v372_v8 = vld [vmem:[#allocation3 + $0x44] ss:$8 sps:$4 sm:$0xff]   ;;  %v374_v9 = vld [vmem:[#allocation3 + $0x40] ss:$8 sps:$4 sm:$0xff]   ;;  %v375_v10 = vld [vmem:[#allocation3 + $0x54] ss:$8 sps:$4 sm:$0xff]  }
  0x16   :  { %v377_v11 = vld [vmem:[#allocation3 + $0x50] ss:$8 sps:$4 sm:$0xff]   ;;  %v378_v12 = vld [vmem:[#allocation3 + $0x64] ss:$8 sps:$4 sm:$0xff]   ;;  %v380_v14 = vld [vmem:[#allocation3 + $0x60] ss:$8 sps:$4 sm:$0xff]  }
  0x17   :  { %v410_v13 = vld [vmem:[%s491_s0 + $0x4] ss:$8 sps:$4 sm:$0xff]   ;;  %v381_v15 = vld [vmem:[#allocation3 + $0x74] ss:$8 sps:$4 sm:$0xff]   ;;  %v383_v16 = vld [vmem:[#allocation3 + $0x70] ss:$8 sps:$4 sm:$0xff]  }
  0x18   :  { %259 = vmatpush1.bf16.msra.mxu0 %v365_v3  ;;  %288 = vmatprep.mubr.bf16.mxu0 %v410_v13  ;;  %v384_v17 = vld [vmem:[#allocation3 + $0x84] ss:$8 sps:$4 sm:$0xff]   ;;  %v386_v18 = vld [vmem:[#allocation3 + $0x80] ss:$8 sps:$4 sm:$0xff]   ;;  %v387_v19 = vld [vmem:[#allocation3 + $0x94] ss:$8 sps:$4 sm:$0xff]  }
  0x19   :  { %260 = vmatprep.subr.bf16.mxu0 %v366_v4  ;;  %v389_v20 = vld [vmem:[#allocation3 + $0x90] ss:$8 sps:$4 sm:$0xff]   ;;  %v390_v21 = vld [vmem:[#allocation3 + $0xa4] ss:$8 sps:$4 sm:$0xff]   ;;  %v392_v22 = vld [vmem:[#allocation3 + $0xa0] ss:$8 sps:$4 sm:$0xff]  }
  0x1a   :  { %v393_v23 = vld [vmem:[#allocation3 + $0xb4] ss:$8 sps:$4 sm:$0xff]   ;;  %v395_v24 = vld [vmem:[#allocation3 + $0xb0] ss:$8 sps:$4 sm:$0xff]   ;;  %v396_v25 = vld [vmem:[#allocation3 + $0xc4] ss:$8 sps:$4 sm:$0xff]  }
  0x1b   :  { %v398_v26 = vld [vmem:[#allocation3 + $0xc0] ss:$8 sps:$4 sm:$0xff]   ;;  %v399_v27 = vld [vmem:[#allocation3 + $0xd4] ss:$8 sps:$4 sm:$0xff]   ;;  %v401_v28 = vld [vmem:[#allocation3 + $0xd0] ss:$8 sps:$4 sm:$0xff]  }
  0x1c   :  { %261 = vmatpush1.bf16.msra.mxu0 %v368_v5  ;;  %v402_v29 = vld [vmem:[#allocation3 + $0xe4] ss:$8 sps:$4 sm:$0xff]   ;;  %v404_v30 = vld [vmem:[#allocation3 + $0xe0] ss:$8 sps:$4 sm:$0xff]   ;;  %v405_v31 = vld [vmem:[#allocation3 + $0xf4] ss:$8 sps:$4 sm:$0xff]  }
  0x1d   :  { %262 = vmatprep.subr.bf16.mxu0 %v369_v6  ;;  %v407_v32 = vld [vmem:[#allocation3 + $0xf0] ss:$8 sps:$4 sm:$0xff]   ;;  %v408_v33 = vld [vmem:[%s491_s0] ss:$8 sps:$4 sm:$0xff]   ;;  %v35_v35 = vshrl.u32 %v34_v34, 7 }
  0x1e   :  { %v32_v37 = vld [vmem:[%s493_s2] sm:$0x3] }
  0x1f   :  { %v36_v36 = vsub.s32 0, %v35_v35  ;;  %v40_v38 = vsub.s32 1, %v35_v35 }
  0x20   :  { %263 = vmatpush1.bf16.msra.mxu0 %v371_v7 }
  0x21   :  { %264 = vmatprep.subr.bf16.mxu0 %v372_v8  ;;  %v37_v39 = vrot.slane %v32_v37, %v36_v36  ;;  %v41_v40 = vrot.slane %v32_v37, %v40_v38 }
  0x24   :  { %265 = vmatpush1.bf16.msra.mxu0 %v374_v9 }
  0x25   :  { %266 = vmatprep.subr.bf16.mxu0 %v375_v10 }
  0x28   :  { %267 = vmatpush1.bf16.msra.mxu0 %v377_v11 }
  0x29   :  { %268 = vmatprep.subr.bf16.mxu0 %v378_v12 }
  0x2c   :  { %269 = vmatpush1.bf16.msra.mxu0 %v380_v14 }
  0x2d   :  { %270 = vmatprep.subr.bf16.mxu0 %v381_v15 }
  0x30   :  { %271 = vmatpush1.bf16.msra.mxu0 %v383_v16 }
  0x31   :  { %272 = vmatprep.subr.bf16.mxu0 %v384_v17 }
  0x34   :  { %273 = vmatpush1.bf16.msra.mxu0 %v386_v18 }
  0x35   :  { %274 = vmatprep.subr.bf16.mxu0 %v387_v19 }
  0x38   :  { %275 = vmatpush1.bf16.msra.mxu0 %v389_v20 }
  0x39   :  { %276 = vmatprep.subr.bf16.mxu0 %v390_v21 }
  0x3c   :  { %277 = vmatpush1.bf16.msra.mxu0 %v392_v22 }
  0x3d   :  { %278 = vmatprep.subr.bf16.mxu0 %v393_v23 }
  0x40   :  { %279 = vmatpush1.bf16.msra.mxu0 %v395_v24 }
  0x41   :  { %280 = vmatprep.subr.bf16.mxu0 %v396_v25 }
  0x44   :  { %281 = vmatpush1.bf16.msra.mxu0 %v398_v26 }
  0x45   :  { %282 = vmatprep.subr.bf16.mxu0 %v399_v27 }
  0x48   :  { %283 = vmatpush1.bf16.msra.mxu0 %v401_v28 }
  0x49   :  { %284 = vmatprep.subr.bf16.mxu0 %v402_v29 }
  0x4c   :  { %285 = vmatpush1.bf16.msra.mxu0 %v404_v30 }
  0x4d   :  { %286 = vmatprep.subr.bf16.mxu0 %v405_v31 }
  0x50   :  { %287 = vmatpush1.bf16.msra.mxu0 %v407_v32 }
  0x53   :  { %289 = vmatmul.mubr.bf16.vlgmr.msra.gmra.mrb[0].mxu0 %v408_v33 }
 0x126   :  { %v290_v41 = vpop.f32.mrb[0].mxu0 }
 0x127   :  { %v299_v42 = vadd.f32 %v290_v41, %v37_v39  ;;  %v292_v43 = vpop.f32.mrb[1].mxu0 }
 0x128   :  { %v300_v44 = vadd.f32 %v292_v43, %v41_v40  ;;  %v294_v45 = vpop.f32.mrb[2].mxu0 }
 0x129   :  { %314 = vst [vmem:[%s494_s3] sm:$0xff] %v299_v42  ;;  %v301_v46 = vadd.f32 %v294_v45, %v37_v39  ;;  %v296_v47 = vpop.f32.mrb[3].mxu0 }
 0x12a   :  { %315 = vst [vmem:[%s494_s3 + $0x8] sm:$0xff] %v300_v44  ;;  %v302_v48 = vadd.f32 %v296_v47, %v41_v40 }
 0x12b   :  { %316 = vst [vmem:[%s494_s3 + $0x10] sm:$0xff] %v301_v46 }
 0x12c   :  { %317 = vst [vmem:[%s494_s3 + $0x18] sm:$0xff] %v302_v48 }
 0x12d   :  { %322 = vsyncpa [#allocation4], 1 }

</bundles_post_ra>
